<compile_context>
chip_gen: v6e
topology: v6e:2x2x1
jax: 0.10.0
libtpu: 0.0.40
codegen_flags: <defaults>
</compile_context>

<pallas_src>
import functools

import jax
import jax.numpy as jnp
from jax.experimental import pallas as pl
from jax.experimental.pallas import tpu as pltpu

_EPS = 1e-5  # nn.BatchNorm2d default eps


# ----------------------------------------------------------------------------
# Fused kernel: TB batch images per grid step, everything in VMEM/vregs.
# ----------------------------------------------------------------------------
def _spatial_attention_kernel(x_ref, w1_ref, b1_ref, w2_ref, b2_ref,
                              w3_ref, b3_ref, w4_ref, b4_ref,
                              o_ref, pad_ref, *, H, W, D, TB):
    HW = H * W
    Cr = w1_ref.shape[0]
    PAD = D * W + D  # flat-index padding absorbing all +/-D row and column shifts

    # Zero ONLY the halo regions once per grid step: the interior [PAD, PAD+HW) is fully
    # overwritten for every image/conv and the halos are never written with non-zeros.
    pad_ref[:, :PAD] = jnp.zeros((Cr, PAD), jnp.float32)
    pad_ref[:, PAD + HW:] = jnp.zeros((Cr, PAD), jnp.float32)

    # (1, HW) column-validity masks for the +/-D horizontal shifts (hoisted; broadcast
    # happens inside jnp.where, keeping vreg pressure low).
    col = jax.lax.broadcasted_iota(jnp.int32, (1, HW), 1) % W
    mask_l = col >= D          # dx = -D needs  w - D >= 0
    mask_r = col < (W - D)     # dx = +D needs  w + D <  W

    # Resident weights (tiny), loaded once per grid step.
    w1 = w1_ref[...]
    b1 = b1_ref[...]
    w2 = w2_ref[...]
    b2 = b2_ref[...]
    w3 = w3_ref[...]
    b3 = b3_ref[...]
    w4 = w4_ref[...]
    b4 = b4_ref[...]

    def dilated_conv3x3(y_in, wflat, bias):
        # 3x3 dilated conv: 9 shifted taps stacked on sublanes -> ONE K=9*Cr MXU matmul
        # (instead of 9 serial K=Cr dots feeding a VALU accumulate chain).
        pad_ref[:, PAD:PAD + HW] = y_in
        taps = []
        for dy in (-D, 0, D):            # ky = 0, 1, 2
            for dx in (-D, 0, D):        # kx = 0, 1, 2
                s = PAD + dy * W + dx
                tap = pad_ref[:, s:s + HW]                     # (Cr, HW) static slice
                if dx < 0:
                    tap = jnp.where(mask_l, tap, 0.0)
                elif dx > 0:
                    tap = jnp.where(mask_r, tap, 0.0)
                taps.append(tap)
        stacked = jnp.concatenate(taps, axis=0)                # (9*Cr, HW)
        return jnp.dot(wflat, stacked, preferred_element_type=jnp.float32) + bias

    # Static unroll over the TB images of this block; per-image live state is tiny
    # (a few (Cr, HW) tiles) and the x block stays resident in VMEM.
    for t in range(TB):
        xm = x_ref[t].astype(jnp.float32)                      # (C, HW)

        # conv1 (1x1) == matmul over channels: (Cr, C) @ (C, HW)
        y = jnp.dot(w1, xm, preferred_element_type=jnp.float32) + b1

        y = dilated_conv3x3(y, w2, b2)     # conv2 (3x3, dilation=D, padding=D)
        y = dilated_conv3x3(y, w3, b3)     # conv3 (3x3, dilation=D, padding=D)

        # conv4 (1x1 -> 1 channel) with eval-mode BN folded in, then sigmoid.
        a = jnp.dot(w4, y, preferred_element_type=jnp.float32) + b4   # (1, HW)
        att = jax.nn.sigmoid(a)

        # out = x * att + x   (re-read x from the resident VMEM block; att broadcasts
        # over the channel / sublane axis)
        o_ref[t] = (x_ref[t].astype(jnp.float32) * (1.0 + att)).astype(o_ref.dtype)


# ----------------------------------------------------------------------------
# Wrapper: parameter folding + image-tile selection + pallas_call
# ----------------------------------------------------------------------------
def _pick_image_tile(n, target=8):
    """Largest divisor of n that is <= target, keeping >= 2 grid steps when possible."""
    divisors = [d for d in range(1, n + 1) if n % d == 0]
    cands = [d for d in divisors if d <= target] or [1]
    tb = max(cands)
    if n >= 2 and n // tb < 2:
        smaller = [d for d in cands if n // d >= 2]
        if smaller:
            tb = max(smaller)
    return tb


def spatial_attention_forward(x_nchw, p, *, dilation=4, image_tile=None):
    n, c, h, w = x_nchw.shape
    cr = p["w1"].shape[0]
    assert c % cr == 0 and cr >= 1
    assert h > dilation and w > dilation
    hw = h * w

    tb = image_tile if image_tile is not None else _pick_image_tile(n)
    assert n % tb == 0, f"image tile {tb} must divide batch {n}"

    # Free, metadata-only reshape of the contiguous NCHW activation; keep native dtype
    # (no whole-array astype pass at the HBM boundary).
    x3 = x_nchw.reshape(n, c, hw)

    w1 = p["w1"].reshape(cr, c).astype(jnp.float32)
    b1 = p["b1"].reshape(cr, 1).astype(jnp.float32)
    # (Cout, Cin, ky, kx) -> (Cout, ky, kx, Cin) -> (Cout, 9*Cin); tap order ky*3+kx,
    # input channel innermost -> matches the sublane-stacked taps in the kernel.
    w2 = jnp.transpose(p["w2"], (0, 2, 3, 1)).reshape(cr, 9 * cr).astype(jnp.float32)
    b2 = p["b2"].reshape(cr, 1).astype(jnp.float32)
    w3 = jnp.transpose(p["w3"], (0, 2, 3, 1)).reshape(cr, 9 * cr).astype(jnp.float32)
    b3 = p["b3"].reshape(cr, 1).astype(jnp.float32)
    # Fold eval-mode BatchNorm2d(1):  bn(W4 z + b4) = (s*W4) z + s*(b4 - m) + beta
    s = p["bn_g"] / jnp.sqrt(p["bn_v"] + _EPS)
    w4 = (s[:, None] * p["w4"].reshape(1, cr)).astype(jnp.float32)
    b4 = (s * (p["b4"] - p["bn_m"]) + p["bn_b"]).reshape(1, 1).astype(jnp.float32)

    pad_len = hw + 2 * (dilation * w + dilation)
    kernel = functools.partial(_spatial_attention_kernel, H=h, W=w, D=dilation, TB=tb)

    # VMEM budget from the real double-buffered block sizes (+ headroom), not a guess.
    io_block_bytes = 2 * tb * c * hw * x_nchw.dtype.itemsize     # in + out block
    vmem_limit = int(min(96 * 2**20, max(8 * 2**20, 2 * io_block_bytes + (4 << 20))))

    out = pl.pallas_call(
        kernel,
        out_shape=jax.ShapeDtypeStruct((n, c, hw), x_nchw.dtype),
        grid_spec=pltpu.PrefetchScalarGridSpec(
            num_scalar_prefetch=0,
            grid=(n // tb,),
            in_specs=[
                pl.BlockSpec((tb, c, hw), lambda i: (i, 0, 0)),   # x (TB images / step)
                pl.BlockSpec((cr, c), lambda i: (0, 0)),          # w1 (resident)
                pl.BlockSpec((cr, 1), lambda i: (0, 0)),          # b1
                pl.BlockSpec((cr, 9 * cr), lambda i: (0, 0)),     # w2 (flattened taps)
                pl.BlockSpec((cr, 1), lambda i: (0, 0)),          # b2
                pl.BlockSpec((cr, 9 * cr), lambda i: (0, 0)),     # w3
                pl.BlockSpec((cr, 1), lambda i: (0, 0)),          # b3
                pl.BlockSpec((1, cr), lambda i: (0, 0)),          # w4 (BN folded)
                pl.BlockSpec((1, 1), lambda i: (0, 0)),           # b4 (BN folded)
            ],
            out_specs=pl.BlockSpec((tb, c, hw), lambda i: (i, 0, 0)),
            scratch_shapes=[pltpu.VMEM((cr, pad_len), jnp.float32)],
        ),
        compiler_params=pltpu.CompilerParams(
            dimension_semantics=("parallel",),
            vmem_limit_bytes=vmem_limit,
        ),
    )(x3, w1, b1, w2, b2, w3, b3, w4, b4)

    return out.reshape(n, c, h, w)


# ----------------------------------------------------------------------------
# Pure-JAX reference (matches PyTorch eval-mode forward)
# ----------------------------------------------------------------------------
def spatial_attention_reference(x, p, *, dilation=4):
    dn = ("NCHW", "OIHW", "NCHW")
    prec = jax.lax.Precision.HIGHEST

    def conv(z, wgt, bias, pad, dil):
        z = jax.lax.conv_general_dilated(
            z, wgt, (1, 1), ((pad, pad), (pad, pad)), rhs_dilation=(dil, dil),
            dimension_numbers=dn, precision=prec)
        return z + bias[None, :, None, None]

    d = dilation
    y = conv(x, p["w1"], p["b1"], 0, 1)
    y = conv(y, p["w2"], p["b2"], d, d)
    y = conv(y, p["w3"], p["b3"], d, d)
    y = conv(y, p["w4"], p["b4"], 0, 1)
    y = (p["bn_g"][None, :, None, None] * (y - p["bn_m"][None, :, None, None])
         / jnp.sqrt(p["bn_v"][None, :, None, None] + _EPS)
         + p["bn_b"][None, :, None, None])
    y = jax.nn.sigmoid(y)
    return x * y + x


def make_params(key, c, reduction=16):
    cr = c // reduction
    ks = jax.random.split(key, 12)
    nrm = lambda k, shp: 0.1 * jax.random.normal(k, shp, jnp.float32)
    uni = lambda k, shp: jax.random.uniform(k, shp, jnp.float32, 0.5, 1.5)
    return dict(
        w1=nrm(ks[0], (cr, c, 1, 1)), b1=nrm(ks[1], (cr,)),
        w2=nrm(ks[2], (cr, cr, 3, 3)), b2=nrm(ks[3], (cr,)),
        w3=nrm(ks[4], (cr, cr, 3, 3)), b3=nrm(ks[5], (cr,)),
        w4=nrm(ks[6], (1, cr, 1, 1)), b4=nrm(ks[7], (1,)),
        bn_g=uni(ks[8], (1,)), bn_b=nrm(ks[9], (1,)),
        bn_m=nrm(ks[10], (1,)), bn_v=uni(ks[11], (1,)),
    )


if __name__ == "__main__":
    key = jax.random.PRNGKey(0)
    k_x, k_p, k_x2 = jax.random.split(key, 3)

    # Module defaults: reduction=16, dilation=4 -> need C >= 16; pick C=64 (Cr=4).
    N, C, H, W = 2, 64, 16, 16
    x = jax.random.normal(k_x, (N, C, H, W), jnp.float32)   # NCHW, PyTorch-style
    params = make_params(k_p, C, reduction=16)

    out = jax.block_until_ready(spatial_attention_forward(x, params, dilation=4))
    ref = jax.block_until_ready(spatial_attention_reference(x, params, dilation=4))
    assert out.shape == x.shape and out.dtype == x.dtype
    err = float(jnp.max(jnp.abs(out - ref)))
    assert jnp.allclose(out, ref, atol=1e-4, rtol=1e-4), f"mismatch vs reference: {err}"

    # Also exercise the multi-image-per-step path (TB > 1, grid >= 2).
    N2 = 8
    x2 = jax.random.normal(k_x2, (N2, C, H, W), jnp.float32)
    out2 = jax.block_until_ready(spatial_attention_forward(x2, params, dilation=4))
    ref2 = jax.block_until_ready(spatial_attention_reference(x2, params, dilation=4))
    err2 = float(jnp.max(jnp.abs(out2 - ref2)))
    assert jnp.allclose(out2, ref2, atol=1e-4, rtol=1e-4), f"batched mismatch: {err2}"

    print("KERNEL_OK")
</pallas_src>

<mosaic_0001>
module attributes {stable_mosaic.version = 11 : i64} {
  func.func @_spatial_attention_kernel(%arg0: i32, %arg1: memref<1x64x256xf32, #tpu.memory_space<vmem>>, %arg2: memref<4x64xf32, #tpu.memory_space<vmem>>, %arg3: memref<4x1xf32, #tpu.memory_space<vmem>>, %arg4: memref<4x36xf32, #tpu.memory_space<vmem>>, %arg5: memref<4x1xf32, #tpu.memory_space<vmem>>, %arg6: memref<4x36xf32, #tpu.memory_space<vmem>>, %arg7: memref<4x1xf32, #tpu.memory_space<vmem>>, %arg8: memref<1x4xf32, #tpu.memory_space<vmem>>, %arg9: memref<1x1xf32, #tpu.memory_space<vmem>>, %arg10: memref<1x64x256xf32, #tpu.memory_space<vmem>>, %arg11: memref<4x392xf32, #tpu.memory_space<vmem>>) attributes {dimension_semantics = [#tpu.dimension_semantics<parallel>], iteration_bounds = array<i64: 2>, scalar_prefetch = 0 : i64, scratch_operands = 1 : i64, tpu.core_type = #tpu.core_type<tc>, window_params = [{transform_indices = @transform_0, window_bounds = array<i64: 1, 64, 256>}, {pipeline_mode = #tpu.pipeline_mode<synchronous>, transform_indices = @transform_1, window_bounds = array<i64: 4, 64>}, {pipeline_mode = #tpu.pipeline_mode<synchronous>, transform_indices = @transform_2, window_bounds = array<i64: 4, 1>}, {pipeline_mode = #tpu.pipeline_mode<synchronous>, transform_indices = @transform_3, window_bounds = array<i64: 4, 36>}, {pipeline_mode = #tpu.pipeline_mode<synchronous>, transform_indices = @transform_4, window_bounds = array<i64: 4, 1>}, {pipeline_mode = #tpu.pipeline_mode<synchronous>, transform_indices = @transform_5, window_bounds = array<i64: 4, 36>}, {pipeline_mode = #tpu.pipeline_mode<synchronous>, transform_indices = @transform_6, window_bounds = array<i64: 4, 1>}, {pipeline_mode = #tpu.pipeline_mode<synchronous>, transform_indices = @transform_7, window_bounds = array<i64: 1, 4>}, {pipeline_mode = #tpu.pipeline_mode<synchronous>, transform_indices = @transform_8, window_bounds = array<i64: 1, 1>}, {transform_indices = @transform_9, window_bounds = array<i64: 1, 64, 256>}]} {
    %cst = arith.constant 0.000000e+00 : f32
    %0 = vector.broadcast %cst : f32 to vector<4x68xf32>
    %c0 = arith.constant 0 : index
    %c0_0 = arith.constant 0 : index
    %1 = vector.load %arg11[%c0, %c0_0] : memref<4x392xf32, #tpu.memory_space<vmem>>, vector<4x68xf32>
    tpu.vector_store %arg11[%c0, %c0_0], %0 {strides = array<i32>} : memref<4x392xf32, #tpu.memory_space<vmem>>, vector<4x68xf32>,
    %cst_1 = arith.constant 0.000000e+00 : f32
    %2 = vector.broadcast %cst_1 : f32 to vector<4x68xf32>
    %c0_2 = arith.constant 0 : index
    %c324 = arith.constant 324 : index
    %3 = vector.load %arg11[%c0_2, %c324] : memref<4x392xf32, #tpu.memory_space<vmem>>, vector<4x68xf32>
    tpu.vector_store %arg11[%c0_2, %c324], %2 {strides = array<i32>} : memref<4x392xf32, #tpu.memory_space<vmem>>, vector<4x68xf32>,
    %4 = tpu.iota {dimensions = array<i32: 1>} : vector<1x256xi32>
    %c16_i32 = arith.constant 16 : i32
    %c0_i32 = arith.constant 0 : i32
    %5 = arith.cmpi eq, %c16_i32, %c0_i32 : i32
    %c1_i32 = arith.constant 1 : i32
    %6 = arith.select %5, %c1_i32, %c16_i32 : i32
    %7 = vector.broadcast %6 : i32 to vector<1x256xi32>
    %8 = arith.remsi %4, %7 : vector<1x256xi32>
    %c0_i32_3 = arith.constant 0 : i32
    %9 = vector.broadcast %c0_i32_3 : i32 to vector<1x256xi32>
    %10 = arith.cmpi ne, %8, %9 : vector<1x256xi32>
    %c0_i32_4 = arith.constant 0 : i32
    %11 = vector.broadcast %c0_i32_4 : i32 to vector<1x256xi32>
    %12 = arith.cmpi slt, %8, %11 : vector<1x256xi32>
    %c0_i32_5 = arith.constant 0 : i32
    %13 = arith.cmpi slt, %6, %c0_i32_5 : i32
    %14 = vector.broadcast %13 : i1 to vector<1x256xi1>
    %15 = vector.broadcast %14 : vector<1x256xi1> to vector<1x256xi1>
    %16 = arith.xori %12, %15 : vector<1x256xi1>
    %17 = arith.andi %16, %10 : vector<1x256xi1>
    %18 = vector.broadcast %6 : i32 to vector<1x256xi32>
    %19 = arith.addi %8, %18 : vector<1x256xi32>
    %20 = arith.select %17, %19, %8 : vector<1x256xi1>, vector<1x256xi32>
    %c4_i32 = arith.constant 4 : i32
    %21 = vector.broadcast %c4_i32 : i32 to vector<1x256xi32>
    %22 = arith.cmpi sge, %20, %21 : vector<1x256xi32>
    %c12_i32 = arith.constant 12 : i32
    %23 = vector.broadcast %c12_i32 : i32 to vector<1x256xi32>
    %24 = arith.cmpi slt, %20, %23 : vector<1x256xi32>
    %c0_6 = arith.constant 0 : index
    %c0_7 = arith.constant 0 : index
    %25 = vector.load %arg2[%c0_6, %c0_7] : memref<4x64xf32, #tpu.memory_space<vmem>>, vector<4x64xf32>
    %c0_8 = arith.constant 0 : index
    %c0_9 = arith.constant 0 : index
    %26 = vector.load %arg3[%c0_8, %c0_9] : memref<4x1xf32, #tpu.memory_space<vmem>>, vector<4x1xf32>
    %c0_10 = arith.constant 0 : index
    %c0_11 = arith.constant 0 : index
    %27 = vector.load %arg4[%c0_10, %c0_11] : memref<4x36xf32, #tpu.memory_space<vmem>>, vector<4x36xf32>
    %c0_12 = arith.constant 0 : index
    %c0_13 = arith.constant 0 : index
    %28 = vector.load %arg5[%c0_12, %c0_13] : memref<4x1xf32, #tpu.memory_space<vmem>>, vector<4x1xf32>
    %c0_14 = arith.constant 0 : index
    %c0_15 = arith.constant 0 : index
    %29 = vector.load %arg6[%c0_14, %c0_15] : memref<4x36xf32, #tpu.memory_space<vmem>>, vector<4x36xf32>
    %c0_16 = arith.constant 0 : index
    %c0_17 = arith.constant 0 : index
    %30 = vector.load %arg7[%c0_16, %c0_17] : memref<4x1xf32, #tpu.memory_space<vmem>>, vector<4x1xf32>
    %c0_18 = arith.constant 0 : index
    %c0_19 = arith.constant 0 : index
    %31 = vector.load %arg8[%c0_18, %c0_19] : memref<1x4xf32, #tpu.memory_space<vmem>>, vector<1x4xf32>
    %c0_20 = arith.constant 0 : index
    %c0_21 = arith.constant 0 : index
    %32 = vector.load %arg9[%c0_20, %c0_21] : memref<1x1xf32, #tpu.memory_space<vmem>>, vector<1x1xf32>
    %c0_22 = arith.constant 0 : index
    %c0_23 = arith.constant 0 : index
    %c0_24 = arith.constant 0 : index
    %33 = vector.load %arg1[%c0_22, %c0_23, %c0_24] : memref<1x64x256xf32, #tpu.memory_space<vmem>>, vector<1x64x256xf32>
    %34 = vector.shape_cast %33 : vector<1x64x256xf32> to vector<64x256xf32>
    %cst_25 = arith.constant dense<0.000000e+00> : vector<4x256xf32>
    %35 = tpu.matmul %25, %34, %cst_25 {dimension_numbers = #tpu.dot_dimension_numbers<[1], [0], [0], [1], [0, 0, 1, 1], [], []>} : vector<4x64xf32>, vector<64x256xf32>, vector<4x256xf32> -> vector<4x256xf32>
    %36 = vector.broadcast %26 : vector<4x1xf32> to vector<4x256xf32>
    %37 = arith.addf %35, %36 : vector<4x256xf32>
    %c0_26 = arith.constant 0 : index
    %c68 = arith.constant 68 : index
    %38 = vector.load %arg11[%c0_26, %c68] : memref<4x392xf32, #tpu.memory_space<vmem>>, vector<4x256xf32>
    tpu.vector_store %arg11[%c0_26, %c68], %37 {strides = array<i32>} : memref<4x392xf32, #tpu.memory_space<vmem>>, vector<4x256xf32>,
    %c0_27 = arith.constant 0 : index
    %c0_28 = arith.constant 0 : index
    %39 = vector.load %arg11[%c0_27, %c0_28] : memref<4x392xf32, #tpu.memory_space<vmem>>, vector<4x256xf32>
    %cst_29 = arith.constant 0.000000e+00 : f32
    %40 = vector.shape_cast %22 : vector<1x256xi1> to vector<1x256xi1>
    %41 = vector.broadcast %40 : vector<1x256xi1> to vector<4x256xi1>
    %42 = vector.broadcast %cst_29 : f32 to vector<4x256xf32>
    %43 = arith.select %41, %39, %42 : vector<4x256xi1>, vector<4x256xf32>
    %c0_30 = arith.constant 0 : index
    %c4 = arith.constant 4 : index
    %44 = vector.load %arg11[%c0_30, %c4] : memref<4x392xf32, #tpu.memory_space<vmem>>, vector<4x256xf32>
    %c0_31 = arith.constant 0 : index
    %c8 = arith.constant 8 : index
    %45 = vector.load %arg11[%c0_31, %c8] : memref<4x392xf32, #tpu.memory_space<vmem>>, vector<4x256xf32>
    %cst_32 = arith.constant 0.000000e+00 : f32
    %46 = vector.shape_cast %24 : vector<1x256xi1> to vector<1x256xi1>
    %47 = vector.broadcast %46 : vector<1x256xi1> to vector<4x256xi1>
    %48 = vector.broadcast %cst_32 : f32 to vector<4x256xf32>
    %49 = arith.select %47, %45, %48 : vector<4x256xi1>, vector<4x256xf32>
    %c0_33 = arith.constant 0 : index
    %c64 = arith.constant 64 : index
    %50 = vector.load %arg11[%c0_33, %c64] : memref<4x392xf32, #tpu.memory_space<vmem>>, vector<4x256xf32>
    %cst_34 = arith.constant 0.000000e+00 : f32
    %51 = vector.shape_cast %22 : vector<1x256xi1> to vector<1x256xi1>
    %52 = vector.broadcast %51 : vector<1x256xi1> to vector<4x256xi1>
    %53 = vector.broadcast %cst_34 : f32 to vector<4x256xf32>
    %54 = arith.select %52, %50, %53 : vector<4x256xi1>, vector<4x256xf32>
    %c0_35 = arith.constant 0 : index
    %c68_36 = arith.constant 68 : index
    %55 = vector.load %arg11[%c0_35, %c68_36] : memref<4x392xf32, #tpu.memory_space<vmem>>, vector<4x256xf32>
    %c0_37 = arith.constant 0 : index
    %c72 = arith.constant 72 : index
    %56 = vector.load %arg11[%c0_37, %c72] : memref<4x392xf32, #tpu.memory_space<vmem>>, vector<4x256xf32>
    %cst_38 = arith.constant 0.000000e+00 : f32
    %57 = vector.shape_cast %24 : vector<1x256xi1> to vector<1x256xi1>
    %58 = vector.broadcast %57 : vector<1x256xi1> to vector<4x256xi1>
    %59 = vector.broadcast %cst_38 : f32 to vector<4x256xf32>
    %60 = arith.select %58, %56, %59 : vector<4x256xi1>, vector<4x256xf32>
    %c0_39 = arith.constant 0 : index
    %c128 = arith.constant 128 : index
    %61 = vector.load %arg11[%c0_39, %c128] : memref<4x392xf32, #tpu.memory_space<vmem>>, vector<4x256xf32>
    %cst_40 = arith.constant 0.000000e+00 : f32
    %62 = vector.shape_cast %22 : vector<1x256xi1> to vector<1x256xi1>
    %63 = vector.broadcast %62 : vector<1x256xi1> to vector<4x256xi1>
    %64 = vector.broadcast %cst_40 : f32 to vector<4x256xf32>
    %65 = arith.select %63, %61, %64 : vector<4x256xi1>, vector<4x256xf32>
    %c0_41 = arith.constant 0 : index
    %c132 = arith.constant 132 : index
    %66 = vector.load %arg11[%c0_41, %c132] : memref<4x392xf32, #tpu.memory_space<vmem>>, vector<4x256xf32>
    %c0_42 = arith.constant 0 : index
    %c136 = arith.constant 136 : index
    %67 = vector.load %arg11[%c0_42, %c136] : memref<4x392xf32, #tpu.memory_space<vmem>>, vector<4x256xf32>
    %cst_43 = arith.constant 0.000000e+00 : f32
    %68 = vector.shape_cast %24 : vector<1x256xi1> to vector<1x256xi1>
    %69 = vector.broadcast %68 : vector<1x256xi1> to vector<4x256xi1>
    %70 = vector.broadcast %cst_43 : f32 to vector<4x256xf32>
    %71 = arith.select %69, %67, %70 : vector<4x256xi1>, vector<4x256xf32>
    %72 = tpu.concatenate %43, %44, %49, %54, %55, %60, %65, %66, %71 in 0 : vector<4x256xf32>, vector<4x256xf32>, vector<4x256xf32>, vector<4x256xf32>, vector<4x256xf32>, vector<4x256xf32>, vector<4x256xf32>, vector<4x256xf32>, vector<4x256xf32> -> vector<36x256xf32>
    %cst_44 = arith.constant dense<0.000000e+00> : vector<4x256xf32>
    %73 = tpu.matmul %27, %72, %cst_44 {dimension_numbers = #tpu.dot_dimension_numbers<[1], [0], [0], [1], [0, 0, 1, 1], [], []>} : vector<4x36xf32>, vector<36x256xf32>, vector<4x256xf32> -> vector<4x256xf32>
    %74 = vector.broadcast %28 : vector<4x1xf32> to vector<4x256xf32>
    %75 = arith.addf %73, %74 : vector<4x256xf32>
    %c0_45 = arith.constant 0 : index
    %c68_46 = arith.constant 68 : index
    %76 = vector.load %arg11[%c0_45, %c68_46] : memref<4x392xf32, #tpu.memory_space<vmem>>, vector<4x256xf32>
    tpu.vector_store %arg11[%c0_45, %c68_46], %75 {strides = array<i32>} : memref<4x392xf32, #tpu.memory_space<vmem>>, vector<4x256xf32>,
    %c0_47 = arith.constant 0 : index
    %c0_48 = arith.constant 0 : index
    %77 = vector.load %arg11[%c0_47, %c0_48] : memref<4x392xf32, #tpu.memory_space<vmem>>, vector<4x256xf32>
    %cst_49 = arith.constant 0.000000e+00 : f32
    %78 = vector.shape_cast %22 : vector<1x256xi1> to vector<1x256xi1>
    %79 = vector.broadcast %78 : vector<1x256xi1> to vector<4x256xi1>
    %80 = vector.broadcast %cst_49 : f32 to vector<4x256xf32>
    %81 = arith.select %79, %77, %80 : vector<4x256xi1>, vector<4x256xf32>
    %c0_50 = arith.constant 0 : index
    %c4_51 = arith.constant 4 : index
    %82 = vector.load %arg11[%c0_50, %c4_51] : memref<4x392xf32, #tpu.memory_space<vmem>>, vector<4x256xf32>
    %c0_52 = arith.constant 0 : index
    %c8_53 = arith.constant 8 : index
    %83 = vector.load %arg11[%c0_52, %c8_53] : memref<4x392xf32, #tpu.memory_space<vmem>>, vector<4x256xf32>
    %cst_54 = arith.constant 0.000000e+00 : f32
    %84 = vector.shape_cast %24 : vector<1x256xi1> to vector<1x256xi1>
    %85 = vector.broadcast %84 : vector<1x256xi1> to vector<4x256xi1>
    %86 = vector.broadcast %cst_54 : f32 to vector<4x256xf32>
    %87 = arith.select %85, %83, %86 : vector<4x256xi1>, vector<4x256xf32>
    %c0_55 = arith.constant 0 : index
    %c64_56 = arith.constant 64 : index
    %88 = vector.load %arg11[%c0_55, %c64_56] : memref<4x392xf32, #tpu.memory_space<vmem>>, vector<4x256xf32>
    %cst_57 = arith.constant 0.000000e+00 : f32
    %89 = vector.shape_cast %22 : vector<1x256xi1> to vector<1x256xi1>
    %90 = vector.broadcast %89 : vector<1x256xi1> to vector<4x256xi1>
    %91 = vector.broadcast %cst_57 : f32 to vector<4x256xf32>
    %92 = arith.select %90, %88, %91 : vector<4x256xi1>, vector<4x256xf32>
    %c0_58 = arith.constant 0 : index
    %c68_59 = arith.constant 68 : index
    %93 = vector.load %arg11[%c0_58, %c68_59] : memref<4x392xf32, #tpu.memory_space<vmem>>, vector<4x256xf32>
    %c0_60 = arith.constant 0 : index
    %c72_61 = arith.constant 72 : index
    %94 = vector.load %arg11[%c0_60, %c72_61] : memref<4x392xf32, #tpu.memory_space<vmem>>, vector<4x256xf32>
    %cst_62 = arith.constant 0.000000e+00 : f32
    %95 = vector.shape_cast %24 : vector<1x256xi1> to vector<1x256xi1>
    %96 = vector.broadcast %95 : vector<1x256xi1> to vector<4x256xi1>
    %97 = vector.broadcast %cst_62 : f32 to vector<4x256xf32>
    %98 = arith.select %96, %94, %97 : vector<4x256xi1>, vector<4x256xf32>
    %c0_63 = arith.constant 0 : index
    %c128_64 = arith.constant 128 : index
    %99 = vector.load %arg11[%c0_63, %c128_64] : memref<4x392xf32, #tpu.memory_space<vmem>>, vector<4x256xf32>
    %cst_65 = arith.constant 0.000000e+00 : f32
    %100 = vector.shape_cast %22 : vector<1x256xi1> to vector<1x256xi1>
    %101 = vector.broadcast %100 : vector<1x256xi1> to vector<4x256xi1>
    %102 = vector.broadcast %cst_65 : f32 to vector<4x256xf32>
    %103 = arith.select %101, %99, %102 : vector<4x256xi1>, vector<4x256xf32>
    %c0_66 = arith.constant 0 : index
    %c132_67 = arith.constant 132 : index
    %104 = vector.load %arg11[%c0_66, %c132_67] : memref<4x392xf32, #tpu.memory_space<vmem>>, vector<4x256xf32>
    %c0_68 = arith.constant 0 : index
    %c136_69 = arith.constant 136 : index
    %105 = vector.load %arg11[%c0_68, %c136_69] : memref<4x392xf32, #tpu.memory_space<vmem>>, vector<4x256xf32>
    %cst_70 = arith.constant 0.000000e+00 : f32
    %106 = vector.shape_cast %24 : vector<1x256xi1> to vector<1x256xi1>
    %107 = vector.broadcast %106 : vector<1x256xi1> to vector<4x256xi1>
    %108 = vector.broadcast %cst_70 : f32 to vector<4x256xf32>
    %109 = arith.select %107, %105, %108 : vector<4x256xi1>, vector<4x256xf32>
    %110 = tpu.concatenate %81, %82, %87, %92, %93, %98, %103, %104, %109 in 0 : vector<4x256xf32>, vector<4x256xf32>, vector<4x256xf32>, vector<4x256xf32>, vector<4x256xf32>, vector<4x256xf32>, vector<4x256xf32>, vector<4x256xf32>, vector<4x256xf32> -> vector<36x256xf32>
    %cst_71 = arith.constant dense<0.000000e+00> : vector<4x256xf32>
    %111 = tpu.matmul %29, %110, %cst_71 {dimension_numbers = #tpu.dot_dimension_numbers<[1], [0], [0], [1], [0, 0, 1, 1], [], []>} : vector<4x36xf32>, vector<36x256xf32>, vector<4x256xf32> -> vector<4x256xf32>
    %112 = vector.broadcast %30 : vector<4x1xf32> to vector<4x256xf32>
    %113 = arith.addf %111, %112 : vector<4x256xf32>
    %cst_72 = arith.constant dense<0.000000e+00> : vector<1x256xf32>
    %114 = tpu.matmul %31, %113, %cst_72 {dimension_numbers = #tpu.dot_dimension_numbers<[1], [0], [0], [1], [0, 0, 1, 1], [], []>} : vector<1x4xf32>, vector<4x256xf32>, vector<1x256xf32> -> vector<1x256xf32>
    %115 = vector.broadcast %32 : vector<1x1xf32> to vector<1x256xf32>
    %116 = arith.addf %114, %115 : vector<1x256xf32>
    %117 = arith.negf %116 : vector<1x256xf32>
    %118 = math.exp %117 : vector<1x256xf32>
    %cst_73 = arith.constant 1.000000e+00 : f32
    %119 = vector.broadcast %cst_73 : f32 to vector<1x256xf32>
    %120 = arith.addf %119, %118 : vector<1x256xf32>
    %121 = arith.divf %119, %120 : vector<1x256xf32>
    %c0_74 = arith.constant 0 : index
    %c0_75 = arith.constant 0 : index
    %c0_76 = arith.constant 0 : index
    %122 = vector.load %arg1[%c0_74, %c0_75, %c0_76] : memref<1x64x256xf32, #tpu.memory_space<vmem>>, vector<1x64x256xf32>
    %123 = vector.shape_cast %122 : vector<1x64x256xf32> to vector<64x256xf32>
    %cst_77 = arith.constant 1.000000e+00 : f32
    %124 = vector.broadcast %cst_77 : f32 to vector<1x256xf32>
    %125 = arith.addf %124, %121 : vector<1x256xf32>
    %126 = vector.broadcast %125 : vector<1x256xf32> to vector<64x256xf32>
    %127 = arith.mulf %123, %126 : vector<64x256xf32>
    %c0_78 = arith.constant 0 : index
    %c0_79 = arith.constant 0 : index
    %c0_80 = arith.constant 0 : index
    %128 = vector.load %arg10[%c0_78, %c0_79, %c0_80] : memref<1x64x256xf32, #tpu.memory_space<vmem>>, vector<1x64x256xf32>
    %129 = vector.shape_cast %128 : vector<1x64x256xf32> to vector<64x256xf32>
    %130 = vector.shape_cast %127 : vector<64x256xf32> to vector<1x64x256xf32>
    tpu.vector_store %arg10[%c0_78, %c0_79, %c0_80], %130 {strides = array<i32>} : memref<1x64x256xf32, #tpu.memory_space<vmem>>, vector<1x64x256xf32>,
    return
  }
  func.func @transform_0(%arg0: i32) -> (i32, i32, i32) {
    %c0_i32 = arith.constant 0 : i32
    %c0_i32_0 = arith.constant 0 : i32
    %c0_i32_1 = arith.constant 0 : i32
    return %arg0, %c0_i32, %c0_i32_0 : i32, i32, i32
  }
  func.func @transform_1(%arg0: i32) -> (i32, i32) {
    %c0_i32 = arith.constant 0 : i32
    %c0_i32_0 = arith.constant 0 : i32
    %c0_i32_1 = arith.constant 0 : i32
    return %c0_i32, %c0_i32_0 : i32, i32
  }
  func.func @transform_2(%arg0: i32) -> (i32, i32) {
    %c0_i32 = arith.constant 0 : i32
    %c0_i32_0 = arith.constant 0 : i32
    %c0_i32_1 = arith.constant 0 : i32
    return %c0_i32, %c0_i32_0 : i32, i32
  }
  func.func @transform_3(%arg0: i32) -> (i32, i32) {
    %c0_i32 = arith.constant 0 : i32
    %c0_i32_0 = arith.constant 0 : i32
    %c0_i32_1 = arith.constant 0 : i32
    return %c0_i32, %c0_i32_0 : i32, i32
  }
  func.func @transform_4(%arg0: i32) -> (i32, i32) {
    %c0_i32 = arith.constant 0 : i32
    %c0_i32_0 = arith.constant 0 : i32
    %c0_i32_1 = arith.constant 0 : i32
    return %c0_i32, %c0_i32_0 : i32, i32
  }
  func.func @transform_5(%arg0: i32) -> (i32, i32) {
    %c0_i32 = arith.constant 0 : i32
    %c0_i32_0 = arith.constant 0 : i32
    %c0_i32_1 = arith.constant 0 : i32
    return %c0_i32, %c0_i32_0 : i32, i32
  }
  func.func @transform_6(%arg0: i32) -> (i32, i32) {
    %c0_i32 = arith.constant 0 : i32
    %c0_i32_0 = arith.constant 0 : i32
    %c0_i32_1 = arith.constant 0 : i32
    return %c0_i32, %c0_i32_0 : i32, i32
  }
  func.func @transform_7(%arg0: i32) -> (i32, i32) {
    %c0_i32 = arith.constant 0 : i32
    %c0_i32_0 = arith.constant 0 : i32
    %c0_i32_1 = arith.constant 0 : i32
    return %c0_i32, %c0_i32_0 : i32, i32
  }
  func.func @transform_8(%arg0: i32) -> (i32, i32) {
    %c0_i32 = arith.constant 0 : i32
    %c0_i32_0 = arith.constant 0 : i32
    %c0_i32_1 = arith.constant 0 : i32
    return %c0_i32, %c0_i32_0 : i32, i32
  }
  func.func @transform_9(%arg0: i32) -> (i32, i32, i32) {
    %c0_i32 = arith.constant 0 : i32
    %c0_i32_0 = arith.constant 0 : i32
    %c0_i32_1 = arith.constant 0 : i32
    return %arg0, %c0_i32, %c0_i32_0 : i32, i32, i32
  }
}

</mosaic_0001>

<bundles_post_ra>
// kernel: tpu_custom_call.1
= control target key start
LH: loop header
LB: loop body
LE: loop exit
PB: predicated region body
PF: predicated region fallthrough
CT: control target
= control target key end

     0   :  { %s1960_s0 = inlined_call_operand.hbm [shape: f32[2,64,256], index: 0, kind: input, shape index: {}]   ;;  %s1961_s1 = inlined_call_operand.vmem [shape: f32[4,64], index: 1, kind: input, shape index: {}]   ;;  %s1962_s2 = inlined_call_operand.vmem [shape: f32[4,1], index: 2, kind: input, shape index: {}]   ;;  %s1963_s3 = inlined_call_operand.vmem [shape: f32[4,36], index: 3, kind: input, shape index: {}]   ;;  %s1964_s4 = inlined_call_operand.vmem [shape: f32[4,1], index: 4, kind: input, shape index: {}]   ;;  %s1965_s5 = inlined_call_operand.vmem [shape: f32[4,36], index: 5, kind: input, shape index: {}]   ;;  %s1966_s6 = inlined_call_operand.vmem [shape: f32[4,1], index: 6, kind: input, shape index: {}]   ;;  %s1967_s7 = inlined_call_operand.vmem [shape: f32[1,4], index: 7, kind: input, shape index: {}]   ;;  %s1968_s8 = inlined_call_operand.<no memory space> [shape: f32[1,1], index: 8, kind: input, shape index: {}]   ;;  %s1969_s9 = inlined_call_operand.hbm [shape: f32[2,64,256], index: 9, kind: output, shape index: {}]  }
   0x1   :  { %v14_v0 = vstv %s1968_s8 }
   0x2   :  { %15 = vst [vmem:[#allocation3] sm:$0x1] %v14_v0 }
   0x3   :  { %16 = vsyncpa [#allocation5], 0 }
   0x4   :  { %18 = vsyncpa [#allocation5 + $0x1], 0 }
   0x5   :  { %19 = vsyncpa [#allocation6], 0 }
   0x6   :  { %21 = vsyncpa [#allocation6 + $0x1], 0  ;;  %s1455_s11 = smov 0   ;;  %s1457_s12 = smov 0  }
   0x7   :  { %s1459_s13 = smov 0   ;;  %s1461_s14 = smov 0  }
   0x8 LB: > { %s1476_s8 = sadd.s32 4294967295, %s1386_s14   ;;  %s1186_s15 = sadd.s32 4294967294, %s1386_s14   ;;  %s1386_s14 = sphi %s1461_s14, %s1996_s14   ;;  %s1382_s13 = sphi %s1459_s13, %s1995_s13   ;;  %s1378_s12 = sphi %s1457_s12, %s1994_s12   ;;  %s1374_s11 = sphi %s1455_s11, %s1993_s11  }
   0x9   : > { %s1480_s16 = sadd.s32 1, %s1386_s14   ;;  %s34_s17 = sadd.s32 1, %s1382_s13 }
   0xa   : > { %s31_s18 = ssub.s32 %s1386_s14, %s1480_s16  ;;  %p41_p0 = scmp.ne.s32.totalorder %s1382_s13, %s1378_s12 }
   0xb   : > { %p32_p1 = scmp.eq.s32.totalorder %s31_s18, 0  ;;  %p42_p2 = scmp.eq.s32.totalorder %s1386_s14, 0 }
   0xc   : > { %p47_p3 = scmp.ne.s32.totalorder %s1378_s12, %s1374_s11  ;;  %p48_p4 = scmp.eq.s32.totalorder %s1476_s8, 0 }
   0xd   : > { %s1492_s19 = scalar_select %p32_p1, %s1382_s13, %s34_s17  }
   0xe   : > { %p1494_p5 = por %p42_p2, %p41_p0  ;;  %p1498_p6 = por %p48_p4, %p47_p3 }
   0xf   : > { %1972 = sst [smem:[#allocation10_spill]] %s1492_s19  ;;  %p239_p7 = scmp.eq.s32.totalorder %s1476_s8, 1 }
  0x10   : > { %s1974_s21 = scalar_select %p1498_p6, 1, 0 }
  0x11   : > { %p245_p8 = scmp.eq.s32.totalorder %s1186_s15, 1  ;;  %p1226_p10 = scmp.lt.s32.totalorder %s1386_s14, 2 }
  0x12   : > { %p1505_p11 = por %p239_p7, %p41_p0  ;;  %s289_s24 = sand.u32 1, %s1382_s13  }
  0x13   : > { %p1509_p12 = por %p245_p8, %p47_p3  ;;  %s1212_s25 = sshll.u32 %s1386_s14, 11 }
  0x14   : > { %s1975_s22 = scalar_select %p1505_p11, 1, 0 }
  0x15   : > { %s1976_s23 = scalar_select %p1509_p12, 1, 0 }
  0x16   : > { %s1189_s26 = sshll.u32 %s289_s24, 7  ;;  %s1518_s29 = scalar_lea.hbm %s1960_s0, %s1212_s25 }
  0x17   : > { %s293_s30 = scalar_lea.vmem [#allocation4], %s1189_s26  ;;  %p1522_p13 = pnand %p1226_p10, %p1494_p5 }
  0x18   : > { %s300_s10 = sshll.u32 %s293_s30, 4  ;;  %s1528_s17 = scalar_lea.sflag [#allocation5], %s289_s24  ;;  %s1526_s10 = int_to_ptr.vmem [resolvable:$true] %s300_s10 }
  0x19   : > { %s1294_s18 = scalar_lea.hbm %s1518_s29, 2048  ;;  %p1296_p1 = pneg %p1522_p13 }
  0x1a   : > { %p1295_p0 = scmp.ne.s32.totalorder %s1518_s29, %s1294_s18  ;;  %s1299_s26 = scalar_lea.hbm %s1960_s0, 4096 }
  0x1b   : > { %p1300_p4 = scmp.lt.s32.totalorder %s1518_s29, %s1960_s0  ;;  %p1301_p5 = scmp.lt.s32.totalorder %s1299_s26, %s1294_s18 }
  0x1c   : > { %p1297_p2 = pnand %p1296_p1, %p1295_p0 }
  0x1d   : > { %p1302_p7 = por %p1301_p5, %p1300_p4 }
  0x1e   : > { %p1298_p3 = pneg %p1297_p2 }
  0x20   : > { %p1303_p8 = pnand %p1302_p7, %p1298_p3 }
  0x22   : > { %1306 = shalt.err (!%p1303_p8)
}
  0x23   : > { %s1307_s24 = scalar_lea.vmem %s1526_s10, 2048  ;;  %s1388_s30 = smov [#allocation4]  }
  0x24   : > { %p1308_p10 = scmp.ne.s32.totalorder %s1526_s10, %s1307_s24  ;;  %s1312_s19 = sshll.u32 %s1388_s30, 4  ;;  %s1313_s19 = int_to_ptr.vmem [resolvable:$false] %s1312_s19 }
  0x25   : > { %s1314_s25 = scalar_lea.vmem %s1313_s19, 4096  ;;  %p1315_p2 = scmp.lt.s32.totalorder %s1526_s10, %s1313_s19 }
  0x26   : > { %p1310_p9 = pnand %p1308_p10, %p1296_p1  ;;  %p1316_p12 = scmp.lt.s32.totalorder %s1314_s25, %s1307_s24 }
  0x28   : > { %p1311_p0 = pneg %p1310_p9  ;;  %p1317_p11 = por %p1316_p12, %p1315_p2 }
  0x2a   : > { %p1318_p6 = pnand %p1317_p11, %p1311_p0 }
  0x2c   : > { %1321 = shalt.err (!%p1318_p6)
}
  0x2d   : > { %s1389_s18 = smov 256   ;;  %s1390_s27 = smov 16  }
  0x2e   : > { %1221 = dma.hbm_to_vmem [thread:$0]  (!%p1522_p13), %s1518_s29, 2048, %s1526_s10, %s1528_s17, %s1389_s18, %s1389_s18, %s1390_s27  }
  0x2f   : > { %p1192_p9 = scmp.ge.s32.totalorder %s1386_s14, 1  ;;  %p308_p1 = scmp.lt.s32.totalorder %s1386_s14, 3 }
  0x31   : > { %p309_p3 = pnand %p1192_p9, %p308_p1 }
  0x32   : > { %s1552_s19 = sand.u32 (!%p309_p3), 1, %s1378_s12   ;;  %p1978_p6 = scmp.ne.s32.totalorder (!%p309_p3), %s1974_s21, 0 }
  0x33   : > { %312 = sbr.rel (%p309_p3) target bundleno = 1491 (0x5d3), region = 56  ;;  %s1193_s26 = sshll.u32 (!%p309_p3), %s1552_s19, 7 }
  0x34   : > { %s315_s20 = scalar_lea.sflag (!%p309_p3), [#allocation5], %s1552_s19  ;;  %s1558_s28 = scalar_lea.vmem (!%p309_p3), [#allocation4], %s1193_s26 }
  0x38   : > { %1365 = dma.done.wait (%p1978_p6), %s315_s20, 2048  }
  0x39   : > { %1367 = vsyncadd (%p1978_p6), %s315_s20, 4294965248  ;;  %v1391_v1 = vmov 0.0   ;;  %v1392_v2 = vmov 0   ;;  %v1567_v3 = vld [vmem:[%s1558_s28 + $0x78] sm:$0xff]  ;;  %v1570_v4 = vld [vmem:[%s1558_s28 + $0x70] sm:$0xff]  ;;  %vm419_vm0 = vcmask 523264   ;;  %v359_v49 = vlaneseq }
  0x3a   : > { %487 = vmatprep.mubr.f32.mxu0 %v1391_v1  ;;  %1272 = vset.pattern.permute.xlu0 %v1392_v2  ;;  %v1573_v5 = vld [vmem:[%s1558_s28 + $0x68] sm:$0xff]  ;;  %v1577_v6 = vld [vmem:[%s1558_s28 + $0x60] sm:$0xff]  ;;  %v1581_v7 = vld [vmem:[%s1558_s28 + $0x58] sm:$0xff]  ;;  %vm353_vm1 = vcmask 551936   ;;  %vm355_vm2 = vcmask 1044000   ;;  %vm356_vm3 = vcmask 64516  }
  0x3b   : > { %718 = vmatprep.mubr.f32.mxu1 %v1391_v1  ;;  %1273 = vset.pattern.permute.xlu1 %v1392_v2  ;;  %v1585_v8 = vld [vmem:[%s1558_s28 + $0x50] sm:$0xff]  ;;  %v1589_v9 = vld [vmem:[%s1558_s28 + $0x48] sm:$0xff]  ;;  %v1593_v10 = vld [vmem:[%s1558_s28 + $0x40] sm:$0xff]  ;;  %354 = vst.msk [vmem:[#allocation2] sm:$0xf] %vm353_vm1, %v1391_v1  ;;  %s1393_s17 = smov 120  }
  0x3c   : > { %439 = vmatprep.subr.mxu0 %v1567_v3  ;;  %v391_v11 = vld [vmem:[%s1962_s2] sm:$0xf]  ;;  %v1600_v12 = vld [vmem:[%s1558_s28 + $0x38] sm:$0xff]  ;;  %v1612_v15 = vld [vmem:[%s1558_s28 + $0x20] sm:$0xff]  ;;  %s1394_s24 = smov 124   ;;  %s1395_s30 = smov 68  }
  0x3d   : > { %440 = vmatpush1.msra.mxu0 %v1570_v4  ;;  %416 = vperm.xlu0 %1272, %v391_v11   ;;  %v1604_v13 = vld [vmem:[%s1558_s28 + $0x30] sm:$0xff]  ;;  %v1608_v14 = vld [vmem:[%s1558_s28 + $0x28] sm:$0xff]  ;;  %v1616_v16 = vld [vmem:[%s1558_s28 + $0x18] sm:$0xff]  ;;  %vm504_vm5 = vcmask 1047556   ;;  %vm500_vm6 = vcmask 556032   ;;  %s1396_s25 = smov 56  }
  0x3e   : > { %441 = vmatprep.subr.mxu0 %v1573_v5  ;;  %v1620_v17 = vld [vmem:[%s1558_s28 + $0x10] sm:$0xff]  ;;  %v1624_v18 = vld [vmem:[%s1558_s28 + $0x8] sm:$0xff]  ;;  %v1628_v19 = vld [vmem:[%s1558_s28] sm:$0xff]  ;;  %s1397_s18 = smov 64   ;;  %s1398_s27 = smov 60   ;;  %v360_v52 = vand.u32 127, %v359_v49 }
  0x3f   : > { %442 = vmatpush1.msra.mxu0 %v1577_v6  ;;  %v390_v20 = vld [vmem:[%s1961_s1] sm:$0xf]  ;;  %vm357_vm4 = vmor %vm356_vm3, %vm355_vm2  ;;  %vm555_vm8 = vcmask 457728   ;;  %vm590_vm9 = vcmask 1014784   ;;  %vm530_vm11 = vcmask 982016   ;;  %vm630_vm15 = vcmask 1043456  }
  0x40   : > { %443 = vmatprep.subr.mxu0 %v1581_v7  ;;  %358 = vst.msk [vmem:[#allocation2 + $0x8] sm:$0xff] %vm357_vm4, %v1391_v1  ;;  %vm1646_vm7 = vmor %vm504_vm5, %vm355_vm2  ;;  %v393_v40 = vld [vmem:[%s1964_s4] sm:$0xf]  ;;  %v361_v55 = vadd.s32 128, %v360_v52  ;;  %v366_v57 = vand.u32 15, %v360_v52  ;;  %vm607_vm2 = vcmask 490496  }
  0x41   : > { %444 = vmatpush1.msra.mxu0 %v1585_v8  ;;  %vm644_vm3 = vcmask 293888   ;;  %v394_v63 = vld [vmem:[%s1965_s5] sm:$0xf]  ;;  %s1100_s21 = scalar_lea.sflag [#allocation6], %s1552_s19  ;;  %p1989_p12 = scmp.ne.s32.totalorder %s1975_s22, 0 }
  0x42   : > { %445 = vmatprep.subr.mxu0 %v1589_v9  ;;  %v373_v58 = vand.u32 15, %v361_v55  ;;  %vm1704_vm10 = vcmp.lt.s32.totalorder %v366_v57, 12  ;;  %vm1714_vm13 = vcmp.ge.s32.totalorder %v366_v57, 4  ;;  %v396_v2 = vld [vmem:[%s1967_s7] sm:$0x1]  ;;  %s1399_s10 = smov [#allocation7]  }
  0x43   : > { %446 = vmatpush1.msra.mxu0 %v1593_v10  ;;  %s1326_s15 = sshll.u32 %s1399_s10, 4  ;;  %s1327_s15 = int_to_ptr.vmem [resolvable:$false] %s1326_s15 }
  0x44   : > { %447 = vmatprep.subr.mxu0 %v1600_v12  ;;  %vm1709_vm12 = vcmp.lt.s32.totalorder %v373_v58, 12  ;;  %vm1718_vm14 = vcmp.ge.s32.totalorder %v373_v58, 4 }
  0x45   : > { %448 = vmatpush1.msra.mxu0 %v1604_v13 }
  0x46   : > { %449 = vmatprep.subr.mxu0 %v1608_v14 }
  0x47   : > { %450 = vmatpush1.msra.mxu0 %v1612_v15  ;;  %v568_v21 = vld [vmem:[#allocation2 + $0xc] sm:$0xf] }
  0x48   : > { %451 = vmatprep.subr.mxu0 %v1616_v16  ;;  %574 = vrot.lane.b32.xlu1 %v568_v21, %s1393_s17  ;;  %v619_v22 = vcombine.low %v568_v21, %v568_v21 }
  0x49   : > { %452 = vmatpush1.msra.mxu0 %v1620_v17 }
  0x4a   : > { %453 = vmatprep.subr.mxu0 %v1624_v18 }
  0x4b   : > { %454 = vmatpush1.msra.mxu0 %v1628_v19 }
  0x4c   : > { %1195 = vmatmul.mubr.msk.f32.vlgmr.msra.gmra.mxu0 %vm419_vm0, %v390_v20  ;;  %624 = vrot.lane.b32.xlu1 %v619_v22, %s1394_s24 }
  0x4d   : > { %1022 = vmatprep.mubr.f32.mxu0 %v1391_v1 }
  0xb8   : > { %v417_v23 = vpop.permute.xlu0 %416 }
  0xba   : > { %v575_v42 = vpop.permute.xlu1 %574 }
  0xbe   : > { %v625_v43 = vpop.permute.xlu1 %624 }
 0x10c   : > { %v489_v24 = vpop.f32.mrf.mxu0 }
 0x10d   : > { %v490_v26 = vadd.f32 %v489_v24, %v417_v23 }
 0x10e   : > { %v491_v25 = vpop.f32.mrf.mxu0 }
 0x10f   : > { %v492_v27 = vadd.f32 %v491_v25, %v417_v23 }
 0x111   : > { %v496_v28 = vcombine.low %v490_v26, %v492_v27 }
 0x113   : > { %497 = vrot.lane.b32.xlu0 %v496_v28, %s1395_s30 }
 0x185   : > { %v498_v29 = vpop.permute.xlu0 %497 }
 0x186   : > { %v499_v31 = vrot.slane %v498_v29, 4 }
 0x188   : > { %v501_v32 = vsel %vm500_vm6, %v499_v31, %v498_v29  ;;  %507 = vst.msk [vmem:[#allocation2 + $0x8] sm:$0xf] %vm353_vm1, %v499_v31 }
 0x189   : > { %506 = vst.msk [vmem:[#allocation2] sm:$0xff] %vm1646_vm7, %v501_v32 }
 0x18f   : > { %v518_v33 = vld [vmem:[#allocation2 + $0x8] sm:$0xf] }
 0x190   : > { %553 = vrot.lane.b32.xlu1 %v518_v33, %s1396_s25  ;;  %v1655_v34 = vld [vmem:[#allocation2 + $0x4] sm:$0xff]  ;;  %v583_v39 = vcombine.low %v518_v33, %v518_v33 }
 0x191   : > { %570 = vrot.lane.b32.xlu0 %v1655_v34, %s1393_s17  ;;  %v1663_v35 = vld [vmem:[#allocation2] sm:$0xff]  ;;  %v564_v37 = vcombine.high %v1655_v34, %v1655_v34  ;;  %v618_v38 = vcombine.low %v1655_v34, %v1655_v34 }
 0x192   : > { %v1672_v36 = vcombine.high %v1663_v35, %v1663_v35  ;;  %v582_v41 = vcombine.low %v1663_v35, %v1663_v35 }
 0x193   : > { %v567_v31 = vsel %vm1718_vm14, %v564_v37, 0.0 }
 0x194   : > { %541 = vrot.lane.b32.xlu1 %v518_v33, %s1397_s18 }
 0x195   : > { %622 = vrot.lane.b32.xlu0 %v1655_v34, %s1394_s24 }
 0x198   : > { %605 = vrot.lane.b32.xlu1 %v518_v33, %s1398_s27 }
 0x199   : > { %601 = vrot.lane.b32.xlu0 %v1663_v35, %s1398_s27 }
 0x19c   : > { %528 = vrot.lane.b32.xlu1 %v518_v33, %s1393_s17 }
 0x19d   : > { %586 = vrot.lane.b32.xlu0 %v1663_v35, %s1394_s24 }
 0x1a0   : > { %549 = vrot.lane.b32.xlu1 %v1663_v35, %s1396_s25 }
 0x1a1   : > { %551 = vrot.lane.b32.xlu0 %v1672_v36, %s1396_s25 }
 0x1a4   : > { %537 = vrot.lane.b32.xlu1 %v1663_v35, %s1397_s18 }
 0x1a5   : > { %539 = vrot.lane.b32.xlu0 %v1672_v36, %s1397_s18 }
 0x1a8   : > { %572 = vrot.lane.b32.xlu1 %v564_v37, %s1393_s17 }
 0x1a9   : > { %620 = vrot.lane.b32.xlu0 %v618_v38, %s1394_s24 }
 0x1ac   : > { %524 = vrot.lane.b32.xlu1 %v1663_v35, %s1393_s17 }
 0x1ad   : > { %603 = vrot.lane.b32.xlu0 %v1672_v36, %s1398_s27 }
 0x1b0   : > { %588 = vrot.lane.b32.xlu1 %v583_v39, %s1394_s24 }
 0x1b1   : > { %526 = vrot.lane.b32.xlu0 %v1672_v36, %s1393_s17 }
 0x1b4   : > { %641 = vperm.xlu1 %1273, %v393_v40   ;;  %v566_v40 = vsel %vm1714_vm13, %v1655_v34, 0.0 }
 0x1b5   : > { %584 = vrot.lane.b32.xlu0 %v582_v41, %s1394_s24 }
 0x202   : > { %v554_v44 = vpop.permute.xlu1 %553 }
 0x203   : > { %v571_v45 = vpop.permute.xlu0 %570 }
 0x206   : > { %v542_v46 = vpop.permute.xlu1 %541 }
 0x207   : > { %v623_v47 = vpop.permute.xlu0 %622 }
 0x208   : > { %v627_v21 = vsel %vm590_vm9, %v623_v47, %v625_v43 }
 0x209   : > { %v638_v39 = vsel %vm630_vm15, %v567_v31, %v627_v21  ;;  %v517_v21 = vsel %vm1718_vm14, %v1672_v36, 0.0 }
 0x20a   : > { %v606_v48 = vpop.permute.xlu1 %605 }
 0x20b   : > { %v602_v50 = vpop.permute.xlu0 %601 }
 0x20e   : > { %v529_v51 = vpop.permute.xlu1 %528 }
 0x20f   : > { %v1702_v53 = vpop.permute.xlu0 %586 }
 0x212   : > { %v550_v54 = vpop.permute.xlu1 %549 }
 0x213   : > { %v552_v56 = vpop.permute.xlu0 %551 }
 0x214   : > { %v556_v62 = vsel %vm555_vm8, %v550_v54, %v552_v56  ;;  %v557_v0 = vsel %vm555_vm8, %v552_v56, %v554_v44 }
 0x215   : > { %v560_v22 = vsel %vm1704_vm10, %v556_v62, 0.0  ;;  %v561_v26 = vsel %vm1709_vm12, %v557_v0, 0.0 }
 0x216   : > { %v538_v59 = vpop.permute.xlu1 %537  ;;  %v614_v41 = vrot.slane %v560_v22, 4 }
 0x217   : > { %v540_v60 = vpop.permute.xlu0 %539 }
 0x218   : > { %v543_v32 = vsel %vm419_vm0, %v538_v59, %v540_v60  ;;  %v544_v33 = vsel %vm419_vm0, %v540_v60, %v542_v46 }
 0x219   : > { %v547_v46 = vsel %vm1714_vm13, %v543_v32, 0.0 }
 0x21a   : > { %v573_v20 = vpop.permute.xlu1 %572  ;;  %v597_v56 = vrot.slane %v547_v46, 4 }
 0x21b   : > { %v576_v23 = vsel %vm530_vm11, %v571_v45, %v573_v20  ;;  %v621_v24 = vpop.permute.xlu0 %620  ;;  %v577_v25 = vsel %vm530_vm11, %v573_v20, %v575_v42  ;;  %v615_v42 = vrot.slane %v561_v26, 4 }
 0x21c   : > { %v626_v27 = vsel %vm590_vm9, %v621_v24, %v623_v47  ;;  %v581_v28 = vsel %vm1709_vm12, %v577_v25, 0.0  ;;  %v580_v29 = vsel %vm1704_vm10, %v576_v23, 0.0  ;;  %v548_v47 = vsel %vm1718_vm14, %v544_v33, 0.0  ;;  %v392_v24 = vld [vmem:[%s1963_s3] sm:$0xf] }
 0x21d   : > { %1196 = vmatprep.subr.msk.mxu1 %vm630_vm15, %v581_v28  ;;  %v637_v37 = vsel %vm630_vm15, %v566_v40, %v626_v27  ;;  %v598_v57 = vrot.slane %v548_v47, 4  ;;  %v516_v23 = vsel %vm1714_vm13, %v1663_v35, 0.0  ;;  %v786_v35 = vld [vmem:[#allocation2 + $0xc] sm:$0xf] }
 0x21e   : > { %1197 = vmatpush1.msk.msra.mxu1 %vm630_vm15, %v580_v29  ;;  %v525_v38 = vpop.permute.xlu1 %524  ;;  %v835_v31 = vcombine.low %v786_v35, %v786_v35 }
 0x21f   : > { %678 = vmatprep.subr.mxu1 %v638_v39  ;;  %v604_v43 = vpop.permute.xlu0 %603 }
 0x220   : > { %v608_v44 = vsel %vm607_vm2, %v602_v50, %v604_v43  ;;  %v609_v45 = vsel %vm607_vm2, %v604_v43, %v606_v48  ;;  %679 = vmatpush1.msra.mxu1 %v637_v37  ;;  %v395_v37 = vld [vmem:[%s1966_s6] sm:$0xf] }
 0x221   : > { %v636_v52 = vsel %vm630_vm15, %v609_v45, %v615_v42  ;;  %v635_v34 = vsel %vm630_vm15, %v608_v44, %v614_v41  ;;  %v397_v45 = vld [vmem:[#allocation3] sm:$0x1] }
 0x222   : > { %v589_v54 = vpop.permute.xlu1 %588  ;;  %680 = vmatprep.subr.mxu1 %v636_v52 }
 0x223   : > { %681 = vmatpush1.msra.mxu1 %v635_v34  ;;  %v527_v55 = vpop.permute.xlu0 %526  ;;  %v592_v58 = vsel %vm590_vm9, %v1702_v53, %v589_v54 }
 0x224   : > { %v531_v50 = vsel %vm530_vm11, %v525_v38, %v527_v55  ;;  %v532_v48 = vsel %vm530_vm11, %v527_v55, %v529_v51  ;;  %v632_v22 = vsel %vm630_vm15, %v517_v21, %v592_v58 }
 0x225   : > { %v535_v59 = vsel %vm1704_vm10, %v531_v50, 0.0  ;;  %v536_v60 = vsel %vm1709_vm12, %v532_v48, 0.0 }
 0x226   : > { %v634_v62 = vsel %vm630_vm15, %v536_v60, %v598_v57  ;;  %v633_v0 = vsel %vm630_vm15, %v535_v59, %v597_v56 }
 0x227   : > { %682 = vmatprep.subr.mxu1 %v634_v62  ;;  %v585_v20 = vpop.permute.xlu0 %584 }
 0x228   : > { %v591_v51 = vsel %vm590_vm9, %v585_v20, %v1702_v53  ;;  %683 = vmatpush1.msra.mxu1 %v633_v0 }
 0x229   : > { %684 = vmatprep.subr.mxu1 %v632_v22  ;;  %v631_v25 = vsel %vm630_vm15, %v516_v23, %v591_v51 }
 0x22a   : > { %685 = vmatpush1.msra.mxu1 %v631_v25 }
 0x22b   : > { %1198 = vmatmul.mubr.msk.f32.vlgmr.msra.gmra.mxu1 %vm644_vm3, %v392_v24 }
 0x22c   : > { %932 = vmatprep.mubr.f32.mxu1 %v1391_v1 }
 0x22f   : > { %v642_v36 = vpop.permute.xlu1 %641 }
 0x2eb   : > { %v720_v53 = vpop.f32.mrf.mxu1 }
 0x2ec   : > { %v721_v27 = vadd.f32 %v720_v53, %v642_v36 }
 0x2ed   : > { %v722_v26 = vpop.f32.mrf.mxu1 }
 0x2ee   : > { %v723_v28 = vadd.f32 %v722_v26, %v642_v36 }
 0x2f0   : > { %v727_v29 = vcombine.low %v721_v27, %v723_v28 }
 0x2f2   : > { %728 = vrot.lane.b32.xlu0 %v727_v29, %s1395_s30 }
 0x2f6   : > { %792 = vrot.lane.b32.xlu0 %v786_v35, %s1393_s17 }
 0x2fa   : > { %840 = vrot.lane.b32.xlu0 %v835_v31, %s1394_s24 }
 0x364   : > { %v729_v32 = vpop.permute.xlu0 %728 }
 0x365   : > { %v730_v33 = vrot.slane %v729_v32, 4 }
 0x367   : > { %v731_v38 = vsel %vm500_vm6, %v730_v33, %v729_v32  ;;  %735 = vst.msk [vmem:[#allocation2 + $0x8] sm:$0xf] %vm353_vm1, %v730_v33 }
 0x368   : > { %734 = vst.msk [vmem:[#allocation2] sm:$0xff] %vm1646_vm7, %v731_v38  ;;  %v793_v46 = vpop.permute.xlu0 %792 }
 0x36c   : > { %v841_v47 = vpop.permute.xlu0 %840 }
 0x36e   : > { %v742_v1 = vld [vmem:[#allocation2 + $0x8] sm:$0xf] }
 0x36f   : > { %772 = vrot.lane.b32.xlu0 %v742_v1, %s1396_s25  ;;  %v1786_v39 = vld [vmem:[#allocation2 + $0x4] sm:$0xff]  ;;  %v801_v42 = vcombine.low %v742_v1, %v742_v1 }
 0x370   : > { %788 = vrot.lane.b32.xlu1 %v1786_v39, %s1393_s17  ;;  %v1794_v40 = vld [vmem:[#allocation2] sm:$0xff]  ;;  %v782_v30 = vcombine.high %v1786_v39, %v1786_v39  ;;  %v834_v43 = vcombine.low %v1786_v39, %v1786_v39  ;;  %v784_v31 = vsel %vm1714_vm13, %v1786_v39, 0.0 }
 0x371   : > { %v1808_v41 = vcombine.high %v1794_v40, %v1794_v40  ;;  %v800_v44 = vcombine.low %v1794_v40, %v1794_v40  ;;  %v740_v61 = vsel %vm1714_vm13, %v1794_v40, 0.0 }
 0x372   : > { %v785_v51 = vsel %vm1718_vm14, %v782_v30, 0.0 }
 0x373   : > { %760 = vrot.lane.b32.xlu0 %v742_v1, %s1397_s18 }
 0x374   : > { %838 = vrot.lane.b32.xlu1 %v1786_v39, %s1394_s24 }
 0x377   : > { %822 = vrot.lane.b32.xlu0 %v742_v1, %s1398_s27 }
 0x378   : > { %818 = vrot.lane.b32.xlu1 %v1794_v40, %s1398_s27 }
 0x37b   : > { %748 = vrot.lane.b32.xlu0 %v742_v1, %s1393_s17 }
 0x37c   : > { %804 = vrot.lane.b32.xlu1 %v1794_v40, %s1394_s24 }
 0x37f   : > { %768 = vrot.lane.b32.xlu0 %v1794_v40, %s1396_s25 }
 0x380   : > { %790 = vrot.lane.b32.xlu1 %v782_v30, %s1393_s17 }
 0x383   : > { %756 = vrot.lane.b32.xlu0 %v1794_v40, %s1397_s18 }
 0x384   : > { %770 = vrot.lane.b32.xlu1 %v1808_v41, %s1396_s25 }
 0x387   : > { %744 = vrot.lane.b32.xlu0 %v1794_v40, %s1393_s17  ;;  %v945_v40 = vshrl.u32 %v359_v49, 7 }
 0x388   : > { %758 = vrot.lane.b32.xlu1 %v1808_v41, %s1397_s18  ;;  %s1213_s18 = sshll.u32 %s1476_s8, 11 }
 0x389   : > { %s1911_s28 = scalar_lea.hbm %s1969_s9, %s1213_s18 }
 0x38b   : > { %806 = vrot.lane.b32.xlu0 %v801_v42, %s1394_s24 }
 0x38c   : > { %836 = vrot.lane.b32.xlu1 %v834_v43, %s1394_s24 }
 0x38f   : > { %856 = vperm.xlu0 %1272, %v395_v37  }
 0x390   : > { %820 = vrot.lane.b32.xlu1 %v1808_v41, %s1398_s27  ;;  %s352_s27 = scalar_lea.vmem [#allocation7], %s1193_s26 }
 0x391   : > { %s1113_s20 = sshll.u32 %s352_s27, 4  ;;  %s1913_s20 = int_to_ptr.vmem [resolvable:$true] %s1113_s20 }
 0x392   : > { %s1322_s29 = scalar_lea.vmem %s1913_s20, 2048  ;;  %p1329_p5 = scmp.lt.s32.totalorder %s1913_s20, %s1327_s15 }
 0x393   : > { %p1323_p11 = scmp.ne.s32.totalorder %s1913_s20, %s1322_s29 }
 0x394   : > { %746 = vrot.lane.b32.xlu1 %v1808_v41, %s1393_s17  ;;  %s1328_s17 = scalar_lea.vmem %s1327_s15, 4096 }
 0x395   : > { %p1324_p13 = pnand %p1323_p11, %p1989_p12  ;;  %p1330_p7 = scmp.lt.s32.totalorder %s1328_s17, %s1322_s29 }
 0x397   : > { %p1325_p4 = pneg %p1324_p13  ;;  %p1331_p8 = por %p1330_p7, %p1329_p5 }
 0x398   : > { %802 = vrot.lane.b32.xlu1 %v800_v44, %s1394_s24 }
 0x399   : > { %p1332_p10 = pnand %p1331_p8, %p1325_p4 }
 0x39c   : > { %941 = vperm.xlu1 %1273, %v397_v45  }
 0x3e1   : > { %v773_v52 = vpop.permute.xlu0 %772 }
 0x3e2   : > { %v789_v34 = vpop.permute.xlu1 %788 }
 0x3e5   : > { %v761_v54 = vpop.permute.xlu0 %760 }
 0x3e6   : > { %v839_v55 = vpop.permute.xlu1 %838 }
 0x3e7   : > { %v843_v59 = vsel %vm590_vm9, %v839_v55, %v841_v47 }
 0x3e8   : > { %v853_v23 = vsel %vm630_vm15, %v785_v51, %v843_v59 }
 0x3e9   : > { %v823_v56 = vpop.permute.xlu0 %822 }
 0x3ea   : > { %v819_v57 = vpop.permute.xlu1 %818 }
 0x3ed   : > { %v749_v50 = vpop.permute.xlu0 %748 }
 0x3ee   : > { %v805_v48 = vpop.permute.xlu1 %804 }
 0x3f1   : > { %v769_v60 = vpop.permute.xlu0 %768 }
 0x3f2   : > { %v791_v58 = vpop.permute.xlu1 %790 }
 0x3f3   : > { %v794_v62 = vsel %vm530_vm11, %v789_v34, %v791_v58  ;;  %v795_v0 = vsel %vm530_vm11, %v791_v58, %v793_v46 }
 0x3f4   : > { %v798_v20 = vsel %vm1704_vm10, %v794_v62, 0.0  ;;  %v799_v21 = vsel %vm1709_vm12, %v795_v0, 0.0 }
 0x3f5   : > { %1199 = vmatprep.subr.msk.mxu1 %vm630_vm15, %v799_v21  ;;  %v757_v24 = vpop.permute.xlu0 %756 }
 0x3f6   : > { %v771_v22 = vpop.permute.xlu1 %770  ;;  %1200 = vmatpush1.msk.msra.mxu1 %vm630_vm15, %v798_v20  ;;  %v741_v20 = vsel %vm1718_vm14, %v1808_v41, 0.0 }
 0x3f7   : > { %892 = vmatprep.subr.mxu1 %v853_v23  ;;  %v774_v36 = vsel %vm555_vm8, %v769_v60, %v771_v22  ;;  %v775_v53 = vsel %vm555_vm8, %v771_v22, %v773_v52 }
 0x3f8   : > { %v778_v27 = vsel %vm1704_vm10, %v774_v36, 0.0  ;;  %v779_v28 = vsel %vm1709_vm12, %v775_v53, 0.0 }
 0x3f9   : > { %v745_v29 = vpop.permute.xlu0 %744  ;;  %v830_v1 = vrot.slane %v778_v27, 4  ;;  %v831_v30 = vrot.slane %v779_v28, 4 }
 0x3fa   : > { %v759_v25 = vpop.permute.xlu1 %758 }
 0x3fb   : > { %v762_v33 = vsel %vm419_vm0, %v757_v24, %v759_v25  ;;  %v763_v38 = vsel %vm419_vm0, %v759_v25, %v761_v54  ;;  %vm948_vm0 = vcmask 31744   ;;  %v946_v24 = vsub.s32 0, %v945_v40 }
 0x3fc   : > { %v766_v44 = vsel %vm1714_vm13, %v762_v33, 0.0  ;;  %v767_v39 = vsel %vm1718_vm14, %v763_v38, 0.0 }
 0x3fd   : > { %v807_v47 = vpop.permute.xlu0 %806  ;;  %v814_v34 = vrot.slane %v766_v44, 4  ;;  %v815_v54 = vrot.slane %v767_v39, 4 }
 0x3fe   : > { %v837_v26 = vpop.permute.xlu1 %836 }
 0x3ff   : > { %v842_v35 = vsel %vm590_vm9, %v837_v26, %v839_v55 }
 0x400   : > { %v852_v32 = vsel %vm630_vm15, %v784_v31, %v842_v35 }
 0x401   : > { %893 = vmatpush1.msra.mxu1 %v852_v32 }
 0x402   : > { %v821_v42 = vpop.permute.xlu1 %820 }
 0x403   : > { %v824_v43 = vsel %vm607_vm2, %v819_v57, %v821_v42  ;;  %v825_v37 = vsel %vm607_vm2, %v821_v42, %v823_v56  ;;  %v809_v57 = vsel %vm590_vm9, %v805_v48, %v807_v47 }
 0x404   : > { %v851_v45 = vsel %vm630_vm15, %v825_v37, %v831_v30  ;;  %v850_v46 = vsel %vm630_vm15, %v824_v43, %v830_v1  ;;  %v847_v21 = vsel %vm630_vm15, %v741_v20, %v809_v57 }
 0x405   : > { %894 = vmatprep.subr.mxu1 %v851_v45 }
 0x406   : > { %v747_v52 = vpop.permute.xlu1 %746  ;;  %895 = vmatpush1.msra.mxu1 %v850_v46 }
 0x407   : > { %v750_v55 = vsel %vm530_vm11, %v745_v29, %v747_v52  ;;  %v751_v56 = vsel %vm530_vm11, %v747_v52, %v749_v50 }
 0x408   : > { %v754_v58 = vsel %vm1704_vm10, %v750_v55, 0.0  ;;  %v755_v59 = vsel %vm1709_vm12, %v751_v56, 0.0 }
 0x409   : > { %v849_v60 = vsel %vm630_vm15, %v755_v59, %v815_v54  ;;  %v848_v62 = vsel %vm630_vm15, %v754_v58, %v814_v34 }
 0x40a   : > { %v803_v0 = vpop.permute.xlu1 %802  ;;  %896 = vmatprep.subr.mxu1 %v849_v60  ;;  %v857_v41 = vpop.permute.xlu0 %856 }
 0x40b   : > { %v808_v50 = vsel %vm590_vm9, %v803_v0, %v805_v48  ;;  %897 = vmatpush1.msra.mxu1 %v848_v62 }
 0x40c   : > { %898 = vmatprep.subr.mxu1 %v847_v21  ;;  %v846_v51 = vsel %vm630_vm15, %v740_v61, %v808_v50 }
 0x40d   : > { %899 = vmatpush1.msra.mxu1 %v846_v51 }
 0x40e   : > { %1201 = vmatmul.mubr.msk.f32.vlgmr.msra.gmra.mxu1 %vm644_vm3, %v394_v63 }
 0x417   : > { %v942_v25 = vpop.permute.xlu1 %941 }
 0x418   : > { %v947_v36 = vrot.slane %v942_v25, %v946_v24 }
 0x4ce   : > { %v934_v11 = vpop.f32.mrf.mxu1 }
 0x4cf   : > { %v935_v23 = vadd.f32 %v934_v11, %v857_v41 }
 0x4d0   : > { %v936_v48 = vpop.f32.mrf.mxu1 }
 0x4d1   : > { %v937_v22 = vadd.f32 %v936_v48, %v857_v41 }
 0x4d3   : > { %1202 = vmatprep.subr.msk.mxu0 %vm630_vm15, %v937_v22 }
 0x4d4   : > { %1203 = vmatpush1.msk.msra.mxu0 %vm630_vm15, %v935_v23 }
 0x4d5   : > { %1204 = vmatmul.mubr.msk.f32.vlgmr.msra.gmra.mxu0 %vm948_vm0, %v396_v2 }
 0x595   : > { %v1024_v53 = vpop.f32.mrf.mxu0 }
 0x596   : > { %v1025_v26 = vadd.f32 %v1024_v53, %v947_v36 }
 0x597   : > { %v1026_v27 = vpop.f32.mrf.mxu0 }
 0x598   : > { %v1205_v28 = vmul.f32 -1.442695, %v1025_v26  ;;  %v1027_v29 = vadd.f32 %v1026_v27, %v947_v36 }
 0x59a   : > { %1286 = vpow2.f32 %v1205_v28  ;;  %v1206_v35 = vmul.f32 -1.442695, %v1027_v29 }
 0x59c   : > { %1288 = vpow2.f32 %v1206_v35 }
 0x5a7   : > { %v1287_v31 = vpop.eup %1286 }
 0x5a8   : > { %v1035_v32 = vadd.f32 1.0, %v1287_v31 }
 0x5a9   : > { %v1289_v33 = vpop.eup %1288 }
 0x5aa   : > { %1290 = vrcp.f32 %v1035_v32  ;;  %v1036_v38 = vadd.f32 1.0, %v1289_v33 }
 0x5ac   : > { %1292 = vrcp.f32 %v1036_v38 }
 0x5b7   : > { %v1291_v49 = vpop.eup %1290 }
 0x5b8   : > { %v1057_v1 = vadd.f32 1.0, %v1291_v49 }
 0x5b9   : > { %v1293_v30 = vpop.eup %1292 }
 0x5ba   : > { %v1062_v42 = vrot.slane %v1057_v1, %v946_v24  ;;  %v1058_v43 = vadd.f32 1.0, %v1293_v30 }
 0x5bc   : > { %v1067_v37 = vmul.f32 %v1062_v42, %v1628_v19  ;;  %v1069_v44 = vmul.f32 %v1062_v42, %v1620_v17  ;;  %v1071_v39 = vmul.f32 %v1062_v42, %v1612_v15  ;;  %v1073_v45 = vmul.f32 %v1062_v42, %v1604_v13 }
 0x5bd   : > { %v1075_v46 = vmul.f32 %v1062_v42, %v1593_v10  ;;  %v1077_v47 = vmul.f32 %v1062_v42, %v1585_v8  ;;  %v1079_v52 = vmul.f32 %v1062_v42, %v1577_v6  ;;  %v1081_v34 = vmul.f32 %v1062_v42, %v1570_v4 }
 0x5be   : > { %1083 = vst [vmem:[%s352_s27] sm:$0xff] %v1067_v37  ;;  %1085 = vst [vmem:[%s352_s27 + $0x10] sm:$0xff] %v1069_v44  ;;  %v1066_v17 = vrot.slane %v1058_v43, %v946_v24 }
 0x5bf   : > { %1087 = vst [vmem:[%s352_s27 + $0x20] sm:$0xff] %v1071_v39  ;;  %1089 = vst [vmem:[%s352_s27 + $0x30] sm:$0xff] %v1073_v45 }
 0x5c0   : > { %1091 = vst [vmem:[%s352_s27 + $0x40] sm:$0xff] %v1075_v46  ;;  %1093 = vst [vmem:[%s352_s27 + $0x50] sm:$0xff] %v1077_v47  ;;  %v1068_v10 = vmul.f32 %v1066_v17, %v1624_v18  ;;  %v1070_v8 = vmul.f32 %v1066_v17, %v1616_v16  ;;  %v1072_v6 = vmul.f32 %v1066_v17, %v1608_v14 }
 0x5c1   : > { %1095 = vst [vmem:[%s352_s27 + $0x60] sm:$0xff] %v1079_v52  ;;  %1097 = vst [vmem:[%s352_s27 + $0x70] sm:$0xff] %v1081_v34  ;;  %v1074_v4 = vmul.f32 %v1066_v17, %v1600_v12  ;;  %v1076_v13 = vmul.f32 %v1066_v17, %v1589_v9  ;;  %v1078_v15 = vmul.f32 %v1066_v17, %v1581_v7 }
 0x5c2   : > { %v1080_v16 = vmul.f32 %v1066_v17, %v1573_v5  ;;  %v1082_v14 = vmul.f32 %v1066_v17, %v1567_v3  ;;  %1084 = vst [vmem:[%s352_s27 + $0x8] sm:$0xff] %v1068_v10  ;;  %1086 = vst [vmem:[%s352_s27 + $0x18] sm:$0xff] %v1070_v8 }
 0x5c3   : > { %1088 = vst [vmem:[%s352_s27 + $0x28] sm:$0xff] %v1072_v6  ;;  %1090 = vst [vmem:[%s352_s27 + $0x38] sm:$0xff] %v1074_v4 }
 0x5c4   : > { %1092 = vst [vmem:[%s352_s27 + $0x48] sm:$0xff] %v1076_v13  ;;  %1094 = vst [vmem:[%s352_s27 + $0x58] sm:$0xff] %v1078_v15 }
 0x5c5   : > { %1096 = vst [vmem:[%s352_s27 + $0x68] sm:$0xff] %v1080_v16  ;;  %1098 = vst [vmem:[%s352_s27 + $0x78] sm:$0xff] %v1082_v14 }
 0x5c6   : > { %1335 = shalt.err (!%p1332_p10)
}
 0x5c7   : > { %s1336_s24 = scalar_lea.hbm %s1911_s28, 2048  ;;  %s1340_s18 = scalar_lea.hbm %s1969_s9, 4096 }
 0x5c8   : > { %p1337_p0 = scmp.ne.s32.totalorder %s1911_s28, %s1336_s24  ;;  %p1341_p1 = scmp.lt.s32.totalorder %s1911_s28, %s1969_s9 }
 0x5c9   : > { %p1342_p3 = scmp.lt.s32.totalorder %s1340_s18, %s1336_s24 }
 0x5ca   : > { %p1338_p2 = pnand %p1337_p0, %p1989_p12 }
 0x5cb   : > { %p1343_p6 = por %p1342_p3, %p1341_p1 }
 0x5cc   : > { %p1339_p9 = pneg %p1338_p2 }
 0x5ce   : > { %p1344_p11 = pnand %p1343_p6, %p1339_p9 }
 0x5d0   : > { %1347 = shalt.err (!%p1344_p11)
}
 0x5d1   : > { %s1400_s26 = smov 256   ;;  %s1401_s29 = smov 16  }
 0x5d2   : > { %1216 = dma.vmem_to_hbm [thread:$0]  (%p1989_p12), %s1913_s20, 2048, %s1911_s28, %s1100_s21, %s1400_s26, %s1400_s26, %s1401_s29  }
 0x5d3 PF: > { %s1128_s10 = sand.u32 1, %s1374_s11   ;;  %p1990_p13 = scmp.ne.s32.totalorder %s1976_s23, 0 }
 0x5d4   : > { %p1991_p4 = scmp.ge.s32.totalorder %s1386_s14, 2  ;;  %s1129_s15 = scalar_lea.sflag [#allocation6], %s1128_s10 }
 0x5d6   : > { %p1223_p5 = pnand %p1991_p4, %p1990_p13 }
 0x5d8   : > { %p1224_p7 = pneg %p1223_p5 }
 0x5da   : > { %1369 = dma.done.wait (%p1224_p7), %s1129_s15, 2048  }
 0x5db   : > { %1371 = vsyncadd (%p1224_p7), %s1129_s15, 4294965248  ;;  %s1992_s17 = sld [smem:[#allocation10_spill]]  ;;  %p24_p8 = scmp.ge.s32.totalorder %s1480_s16, 4  }
 0x5dc   : > { %s1993_s11 = smov %s1378_s12  ;;  %s1994_s12 = smov %s1382_s13 }
 0x5dd   : > { %s1996_s14 = smov %s1480_s16  ;;  %26 = sbr.rel (!%p24_p8) target bundleno = 8 (0x8), region = 101 }
 0x5e1   : > { %s1995_s13 = smov %s1992_s17 }
 0x5e2   :  { %1134 = vsyncpa [#allocation5], 1 }
 0x5e3   :  { %1136 = vsyncpa [#allocation5 + $0x1], 1 }
 0x5e4   :  { %1137 = vsyncpa [#allocation6], 1 }
 0x5e5   :  { %1139 = vsyncpa [#allocation6 + $0x1], 1 }

</bundles_post_ra>
